<compile_context>
chip_gen: v6e
topology: v6e:2x2x1
jax: 0.10.0
libtpu: 0.0.40
codegen_flags: <defaults>
</compile_context>

<pallas_src>
import functools

import jax
import jax.numpy as jnp
from jax import lax
from jax.experimental import pallas as pl
from jax.experimental.pallas import tpu as pltpu


def _nce_softmax_loss_kernel(x_ref, o_ref, *, true_b, block_rows,
                             tiles_per_partial):
    """x_ref: (TB, C_pad) scores; o_ref: (1, 1) per-partial running sum."""
    p = pl.program_id(0)          # parallel partial (TensorCore split on v7x)
    t = pl.program_id(1)          # reduction over this partial's row tiles

    @pl.when(t == 0)
    def _init():
        o_ref[...] = jnp.zeros_like(o_ref)

    x = x_ref[...].astype(jnp.float32)                    # cast in-register
    # Numerically stable logsumexp along the class (lane) axis; all 2-D.
    m = jnp.max(x, axis=-1, keepdims=True)                 # (TB, 1)
    s = jnp.sum(jnp.exp(x - m), axis=-1, keepdims=True)    # (TB, 1)
    lse = m + jnp.log(s)                                   # (TB, 1)
    per_row = lse - x[:, 0:1]                              # CE with label 0

    # Mask rows past the true batch (partial / clamped edge tiles contribute 0).
    tile_idx = p * tiles_per_partial + t
    row0 = tile_idx * block_rows
    rows = row0 + lax.broadcasted_iota(jnp.int32, per_row.shape, 0)
    per_row = jnp.where(rows < true_b, per_row, 0.0)

    o_ref[...] += jnp.sum(per_row, axis=0, keepdims=True)  # (1, 1)


def nce_softmax_loss(x, *, block_rows=512, num_partials=2):
    """info-NCE loss. x: [bsz, n_classes, 1] (or [bsz, n_classes]) -> scalar f32."""
    # torch's .squeeze(): only the trailing singleton matters for these scores;
    # squeezing axis=-1 explicitly avoids collapsing bsz == 1.
    if x.ndim == 3 and x.shape[-1] == 1:
        x = jnp.squeeze(x, axis=-1)
    if x.ndim != 2:
        raise ValueError(f"expected [bsz, n_classes(, 1)] scores, got {x.shape}")
    b, c = x.shape

    # Lane-dense class axis: pad to a multiple of 128 with -inf (exp -> 0).
    c_pad = 128 * pl.cdiv(c, 128)
    if c_pad != c:
        x = jnp.pad(x, ((0, 0), (0, c_pad - c)), constant_values=-jnp.inf)

    # Row-tile size: keep each input tile <= ~4 MiB so 2x double-buffering sits
    # comfortably inside v7x's 64 MiB VMEM; rows aligned to the sublane packing
    # of the native dtype (8 f32 / 16 bf16 / 32 int8), or the full batch when
    # it is smaller than one tile.
    itemsize = jnp.dtype(x.dtype).itemsize
    row_align = 8 * max(1, 4 // itemsize)
    max_rows = max(row_align, (4 * 1024 * 1024) // (c_pad * itemsize))
    tb = min(block_rows, max_rows)
    if tb >= b:
        tb = b                                   # single full-extent row block
    else:
        tb = max(row_align, (tb // row_align) * row_align)

    nt = pl.cdiv(b, tb)                          # total row tiles
    p_ct = max(1, min(num_partials, nt))         # parallel partials (2 TCs v7x)
    tpp = pl.cdiv(nt, p_ct)                      # row tiles per partial

    def in_index_map(p, t):
        # Clamp so the DMA never starts past the array; fully out-of-range
        # tiles are zeroed inside the kernel via the *unclamped* row index.
        return (jnp.minimum(p * tpp + t, nt - 1), 0)

    kernel = functools.partial(
        _nce_softmax_loss_kernel,
        true_b=b, block_rows=tb, tiles_per_partial=tpp)

    partials = pl.pallas_call(
        kernel,
        out_shape=jax.ShapeDtypeStruct((p_ct, 1, 1), jnp.float32),
        grid_spec=pltpu.PrefetchScalarGridSpec(
            num_scalar_prefetch=0,
            grid=(p_ct, tpp),
            in_specs=[pl.BlockSpec((tb, c_pad), in_index_map)],
            # Leading partial axis is squeezed (None); kernel sees a (1, 1)
            # accumulator that stays resident across the inner reduction axis.
            out_specs=pl.BlockSpec((None, 1, 1), lambda p, t: (p, 0, 0)),
        ),
        compiler_params=pltpu.CompilerParams(
            dimension_semantics=("parallel", "arbitrary")),
    )(x)

    # Finalize: sum per-core partials and normalize by the true batch size.
    return jnp.sum(partials) / jnp.float32(b)


def _reference_loss(x):
    x2d = jnp.squeeze(x, axis=-1) if (x.ndim == 3 and x.shape[-1] == 1) else x
    x2d = x2d.astype(jnp.float32)
    lse = jax.scipy.special.logsumexp(x2d, axis=-1)
    return jnp.mean(lse - x2d[:, 0])


if __name__ == "__main__":
    key = jax.random.PRNGKey(0)

    # Shipped test size: 8 samples, 1 positive + 32 negatives.
    bsz, n_classes = 8, 33
    x = jax.random.normal(key, (bsz, n_classes, 1), dtype=jnp.float32)
    loss = nce_softmax_loss(x)
    jax.block_until_ready(loss)
    ref = _reference_loss(x)
    assert jnp.allclose(loss, ref, atol=1e-5, rtol=1e-5), (loss, ref)

    # Exercise multi-tile + partial-tile masking + the parallel partial split.
    x2 = jax.random.normal(jax.random.PRNGKey(1), (20, 33, 1), dtype=jnp.float32)
    loss2 = nce_softmax_loss(x2, block_rows=8, num_partials=2)
    jax.block_until_ready(loss2)
    ref2 = _reference_loss(x2)
    assert jnp.allclose(loss2, ref2, atol=1e-5, rtol=1e-5), (loss2, ref2)

    # bf16 scores stay bf16 in HBM; the f32 upcast happens inside the kernel.
    x3 = jax.random.normal(jax.random.PRNGKey(2), (48, 33, 1),
                           dtype=jnp.float32).astype(jnp.bfloat16)
    loss3 = nce_softmax_loss(x3, block_rows=16, num_partials=2)
    jax.block_until_ready(loss3)
    ref3 = _reference_loss(x3.astype(jnp.float32))
    assert jnp.allclose(loss3, ref3, atol=1e-4, rtol=1e-4), (loss3, ref3)

    print("KERNEL_OK")
</pallas_src>

<mosaic_0001>
module attributes {stable_mosaic.version = 11 : i64} {
  func.func @_nce_softmax_loss_kernel(%arg0: i32, %arg1: i32, %arg2: memref<8x128xf32, #tpu.memory_space<vmem>>, %arg3: memref<1x1x1xf32, #tpu.memory_space<vmem>>) attributes {dimension_semantics = [#tpu.dimension_semantics<parallel>, #tpu.dimension_semantics<arbitrary>], iteration_bounds = array<i64: 1, 1>, scalar_prefetch = 0 : i64, scratch_operands = 0 : i64, tpu.core_type = #tpu.core_type<tc>, window_params = [{transform_indices = @transform_0, window_bounds = array<i64: 8, 128>}, {transform_indices = @transform_1, window_bounds = array<i64: 1, 1, 1>}]} {
    %c0_i32 = arith.constant 0 : i32
    %0 = arith.cmpi eq, %arg1, %c0_i32 : i32
    %1 = arith.extui %0 : i1 to i32
    %c0_i32_0 = arith.constant 0 : i32
    %2 = arith.cmpi ne, %1, %c0_i32_0 : i32
    scf.if %2 {
      %cst_12 = arith.constant 0.000000e+00 : f32
      %33 = vector.broadcast %cst_12 : f32 to vector<1x1xf32>
      %c0_13 = arith.constant 0 : index
      %c0_14 = arith.constant 0 : index
      %c0_15 = arith.constant 0 : index
      %34 = vector.load %arg3[%c0_13, %c0_14, %c0_15] : memref<1x1x1xf32, #tpu.memory_space<vmem>>, vector<1x1x1xf32>
      %35 = vector.shape_cast %34 : vector<1x1x1xf32> to vector<1x1xf32>
      %36 = vector.shape_cast %33 : vector<1x1xf32> to vector<1x1x1xf32>
      tpu.vector_store %arg3[%c0_13, %c0_14, %c0_15], %36 {strides = array<i32>} : memref<1x1x1xf32, #tpu.memory_space<vmem>>, vector<1x1x1xf32>,
    } else {
    }
    %c0 = arith.constant 0 : index
    %c0_1 = arith.constant 0 : index
    %3 = vector.load %arg2[%c0, %c0_1] : memref<8x128xf32, #tpu.memory_space<vmem>>, vector<8x128xf32>
    %cst = arith.constant dense<0xFF800000> : vector<8xf32>
    %4 = vector.multi_reduction <maximumf>, %3, %cst [1] : vector<8x128xf32> to vector<8xf32>
    %5 = vector.shape_cast %4 : vector<8xf32> to vector<8x1xf32>
    %6 = vector.broadcast %5 : vector<8x1xf32> to vector<8x128xf32>
    %7 = arith.subf %3, %6 : vector<8x128xf32>
    %8 = math.exp %7 : vector<8x128xf32>
    %cst_2 = arith.constant dense<0.000000e+00> : vector<8xf32>
    %9 = vector.multi_reduction <add>, %8, %cst_2 [1] : vector<8x128xf32> to vector<8xf32>
    %10 = vector.shape_cast %9 : vector<8xf32> to vector<8x1xf32>
    %11 = math.log %10 : vector<8x1xf32>
    %12 = arith.addf %5, %11 : vector<8x1xf32>
    %13 = vector.extract_strided_slice %3 {offsets = [0, 0], sizes = [8, 1], strides = [1, 1]} : vector<8x128xf32> to vector<8x1xf32>
    %14 = arith.subf %12, %13 : vector<8x1xf32>
    %c1_i32 = arith.constant 1 : i32
    %15 = arith.muli %arg0, %c1_i32 : i32
    %16 = arith.addi %15, %arg1 : i32
    %c8_i32 = arith.constant 8 : i32
    %17 = arith.muli %16, %c8_i32 : i32
    %18 = tpu.iota {dimensions = array<i32: 0>} : vector<8x1xi32>
    %19 = vector.broadcast %17 : i32 to vector<8x1xi32>
    %20 = arith.addi %19, %18 : vector<8x1xi32>
    %c8_i32_3 = arith.constant 8 : i32
    %21 = vector.broadcast %c8_i32_3 : i32 to vector<8x1xi32>
    %22 = arith.cmpi slt, %20, %21 : vector<8x1xi32>
    %cst_4 = arith.constant 0.000000e+00 : f32
    %23 = vector.broadcast %cst_4 : f32 to vector<8x1xf32>
    %24 = arith.select %22, %14, %23 : vector<8x1xi1>, vector<8x1xf32>
    %c0_5 = arith.constant 0 : index
    %c0_6 = arith.constant 0 : index
    %c0_7 = arith.constant 0 : index
    %25 = vector.load %arg3[%c0_5, %c0_6, %c0_7] : memref<1x1x1xf32, #tpu.memory_space<vmem>>, vector<1x1x1xf32>
    %26 = vector.shape_cast %25 : vector<1x1x1xf32> to vector<1x1xf32>
    %cst_8 = arith.constant dense<0.000000e+00> : vector<1xf32>
    %27 = vector.multi_reduction <add>, %24, %cst_8 [0] : vector<8x1xf32> to vector<1xf32>
    %28 = vector.shape_cast %27 : vector<1xf32> to vector<1x1xf32>
    %29 = arith.addf %26, %28 : vector<1x1xf32>
    %c0_9 = arith.constant 0 : index
    %c0_10 = arith.constant 0 : index
    %c0_11 = arith.constant 0 : index
    %30 = vector.load %arg3[%c0_9, %c0_10, %c0_11] : memref<1x1x1xf32, #tpu.memory_space<vmem>>, vector<1x1x1xf32>
    %31 = vector.shape_cast %30 : vector<1x1x1xf32> to vector<1x1xf32>
    %32 = vector.shape_cast %29 : vector<1x1xf32> to vector<1x1x1xf32>
    tpu.vector_store %arg3[%c0_9, %c0_10, %c0_11], %32 {strides = array<i32>} : memref<1x1x1xf32, #tpu.memory_space<vmem>>, vector<1x1x1xf32>,
    return
  }
  func.func @transform_0(%arg0: i32, %arg1: i32) -> (i32, i32) {
    %c1_i32 = arith.constant 1 : i32
    %0 = arith.muli %arg0, %c1_i32 : i32
    %1 = arith.addi %0, %arg1 : i32
    %c0_i32 = arith.constant 0 : i32
    %2 = arith.minsi %1, %c0_i32 : i32
    %c0_i32_0 = arith.constant 0 : i32
    %c0_i32_1 = arith.constant 0 : i32
    return %2, %c0_i32_0 : i32, i32
  }
  func.func @transform_1(%arg0: i32, %arg1: i32) -> (i32, i32, i32) {
    %c0_i32 = arith.constant 0 : i32
    %c0_i32_0 = arith.constant 0 : i32
    %c0_i32_1 = arith.constant 0 : i32
    return %arg0, %c0_i32, %c0_i32_0 : i32, i32, i32
  }
}

</mosaic_0001>

<bundles_post_ra>
// kernel: tpu_custom_call.1
= control target key start
LH: loop header
LB: loop body
LE: loop exit
PB: predicated region body
PF: predicated region fallthrough
CT: control target
= control target key end

     0   :  { %6 = vsyncpa [#allocation3], 0  ;;  %s156_s0 = inlined_call_operand.hbm [shape: f32[8,128], index: 0, kind: input, shape index: {}]   ;;  %s157_s1 = inlined_call_operand.hbm [shape: f32[1,1,1], index: 1, kind: output, shape index: {}]  }
   0x1   :  { %7 = vsyncpa [#allocation4], 0  ;;  %s135_s6 = smov [#allocation2]  }
   0x2   :  { %s19_s7 = sshll.u32 %s135_s6, 4  ;;  %s20_s7 = int_to_ptr.vmem [resolvable:$true] %s19_s7 }
   0x3   :  { %s99_s8 = scalar_lea.vmem %s20_s7, 128  ;;  %p104_p1 = scmp.lt.s32.totalorder %s20_s7, %s20_s7 }
   0x4   :  { %p100_p0 = scmp.ne.s32.totalorder %s20_s7, %s99_s8  ;;  %p105_p2 = scmp.lt.s32.totalorder %s99_s8, %s99_s8 }
   0x6   :  { %p106_p3 = por %p105_p2, %p104_p1 }
   0x8   :  { %p107_p4 = pnand %p106_p3, %p100_p0 }
   0xa   :  { %110 = shalt.err (!%p107_p4)
}
   0xb   :  { %22 = dma.hbm_to_vmem [thread:$0]  %s156_s0, 128, %s20_s7, [#allocation3]  }
   0xc   :  { %131 = dma.done.wait [#allocation3], 128  }
   0xd   :  { %132 = vsyncadd [#allocation3], 4294967168  ;;  %vm33_vm0 = vcmask 0   ;;  %v136_v0 = vmov 0.0   ;;  %v35_v1 = vld [vmem:[#allocation2] sm:$0xff]  ;;  %vm56_vm1 = vcmask 7168  }
   0xe   :  { %34 = vst.msk [vmem:[#allocation5] sm:$0x1] %vm33_vm0, %v136_v0  ;;  %36 = vmax.xlane.f32.xlu0 %v35_v1  ;;  %s137_s0 = smov [#allocation5]  }
   0xf   :  { %s73_s11 = sshll.u32 %s137_s0, 4  ;;  %s74_s11 = int_to_ptr.vmem [resolvable:$true] %s73_s11 }
  0x10   :  { %s111_s12 = scalar_lea.vmem %s74_s11, 16  ;;  %s115_s13 = scalar_lea.vmem %s74_s11, 32 }
  0x11   :  { %p112_p5 = scmp.ne.s32.totalorder %s74_s11, %s111_s12  ;;  %p116_p6 = scmp.lt.s32.totalorder %s74_s11, %s74_s11 }
  0x12   :  { %p117_p7 = scmp.lt.s32.totalorder %s115_s13, %s111_s12 }
  0x14   :  { %p118_p8 = por %p117_p7, %p116_p6 }
  0x15   :  { %v55_v17 = vld [vmem:[#allocation5] sm:$0x1] }
  0x16   :  { %p119_p9 = pnand %p118_p8, %p112_p5 }
  0x97   :  { %v37_v2 = vpop.xlane.xlu0 %36 }
  0x98   :  { %v38_v3 = vsub.f32 %v35_v1, %v37_v2 }
  0x9a   :  { %v39_v4 = vmul.f32 1.442695, %v38_v3 }
  0x9c   :  { %87 = vpow2.f32 %v39_v4 }
  0xa9   :  { %v88_v5 = vpop.eup %87 }
  0xaa   :  { %41 = vadd.xlane.f32.xlu0 %v88_v5 }
 0x133   :  { %v42_v6 = vpop.xlane.xlu0 %41 }
 0x134   :  { %89 = vlog2.f32 %v42_v6 }
 0x141   :  { %v90_v7 = vpop.eup %89 }
 0x142   :  { %v44_v8 = vmul.f32 0.6931472, %v90_v7 }
 0x144   :  { %v45_v9 = vadd.f32 %v44_v8, %v37_v2 }
 0x146   :  { %v46_v10 = vsub.f32 %v45_v9, %v35_v1 }
 0x148   :  { %v57_v11 = vsel %vm56_vm1, %v46_v10, 0.0 }
 0x149   :  { %v58_v12 = vrot.slane %v57_v11, 4 }
 0x14b   :  { %v59_v13 = vadd.f32 %v58_v12, %v57_v11 }
 0x14d   :  { %v60_v14 = vrot.slane %v59_v13, 2 }
 0x14f   :  { %v61_v15 = vadd.f32 %v60_v14, %v59_v13 }
 0x151   :  { %v62_v16 = vrot.slane %v61_v15, 1 }
 0x153   :  { %v63_v18 = vadd.f32 %v62_v16, %v61_v15 }
 0x155   :  { %v64_v19 = vadd.f32 %v63_v18, %v55_v17 }
 0x157   :  { %66 = vst.msk [vmem:[#allocation5] sm:$0x1] %vm33_vm0, %v64_v19 }
 0x158   :  { %122 = shalt.err (!%p119_p9)
}
 0x159   :  { %76 = dma.vmem_to_hbm [thread:$0]  %s74_s11, 16, %s157_s1, [#allocation4]  }
 0x15a   :  { %133 = dma.done.wait [#allocation4], 16  }
 0x15b   :  { %134 = vsyncadd [#allocation4], 4294967280 }
 0x15c   :  { %80 = vsyncpa [#allocation3], 1 }
 0x15d   :  { %81 = vsyncpa [#allocation4], 1 }

</bundles_post_ra>
